<compile_context>
chip_gen: v7x
topology: tpu7x:2x2x1
jax: 0.10.0
libtpu: 0.0.40
codegen_flags: <defaults>
</compile_context>

<pallas_src>
from collections import OrderedDict

import jax
import jax.numpy as jnp
from jax.experimental import pallas as pl
from jax.experimental.pallas import tpu as pltpu


# ---------------------------------------------------------------------------
# host-side planning (static per config, cached)
# ---------------------------------------------------------------------------

def _split_plan(keys):
    """Split enabled transforms into (kernel_keys, post_keys, pre_vis).

    * pre_vis: visibility is the first enabled transform -> append the ones
      channel as data in the wrapper (fusable into the input DMA).
    * post_keys: visibility appearing *after* lead_lag (and anything following
      it) is a trivial trailing concat handled in the wrapper, since the
      block-factored kernel output cannot hold a single trailing ones channel.
    """
    keys = tuple(keys)
    kernel_keys, post_keys = keys, ()
    if ('visibility' in keys and 'lead_lag' in keys
            and keys.index('visibility') > keys.index('lead_lag')):
        s = keys.index('visibility')
        kernel_keys, post_keys = keys[:s], keys[s:]
    pre_vis = bool(kernel_keys) and kernel_keys[0] == 'visibility'
    if pre_vis:
        kernel_keys = kernel_keys[1:]
    return kernel_keys, post_keys, pre_vis


def _make_plan(kernel_keys, n, c0):
    """Fully static composed-transform plan for the kernel."""
    has_ll = 'lead_lag' in kernel_keys
    vis_mid = 'visibility' in kernel_keys          # only reachable before lead_lag
    has_bp = 'basepoint' in kernel_keys
    bp_before = has_bp and (not has_ll or
                            kernel_keys.index('basepoint')
                            < kernel_keys.index('lead_lag'))
    bp_after = has_bp and not bp_before
    kb = 2 if has_ll else 1                        # lead / lag channel blocks
    c_out = c0 + (1 if vis_mid else 0)
    t_pre = n + (1 if bp_before else 0)
    t_out = (2 * t_pre - 1 if has_ll else t_pre) + (1 if bp_after else 0)
    return dict(has_ll=has_ll, vis_mid=vis_mid, bp_before=bp_before,
                bp_after=bp_after, kb=kb, c0=c0, c_out=c_out,
                n=n, t_pre=t_pre, t_out=t_out)


def _device_kind():
    try:
        return jax.devices()[0].device_kind.lower()
    except Exception:
        return ''


def _vmem_plan():
    kind = _device_kind()
    if 'v7' in kind:        # 64 MiB physical VMEM, 2 TensorCores per chip
        return dict(block_budget=24 << 20, vmem_cap=56 << 20,
                    max_tile=2048, want_two_steps=True)
    if 'v6' in kind:        # 128 MiB physical VMEM, high HBM bandwidth
        return dict(block_budget=48 << 20, vmem_cap=100 << 20,
                    max_tile=2048, want_two_steps=False)
    # v5e / unknown: 16 MiB default scoped VMEM, lowest HBM bandwidth
    return dict(block_budget=12 << 20, vmem_cap=64 << 20,
                max_tile=512, want_two_steps=False)


def _pick_batch_tile(b_pad, plan, itemsize, vp):
    """Largest lane-dense batch tile whose per-step VMEM footprint (double
    buffered in+out blocks plus the in-kernel lead/lag temporary) fits the
    generation-aware budget."""
    def pad8(c):
        return -(-c // 8) * 8

    in_rows = plan['n'] * pad8(plan['c0'])
    out_rows = plan['kb'] * plan['t_out'] * pad8(plan['c_out'])
    tmp_rows = 2 * plan['t_pre'] * pad8(plan['c0']) if plan['has_ll'] else 0

    def step_bytes(tb):
        return (2 * (in_rows + out_rows) + tmp_rows) * tb * itemsize

    for tb in (2048, 1024, 512, 256, 128):
        if tb > vp['max_tile'] or tb > b_pad or b_pad % tb:
            continue
        if vp['want_two_steps'] and b_pad >= 256 and b_pad // tb < 2:
            continue                     # keep both v7x TensorCores busy
        if step_bytes(tb) <= vp['block_budget']:
            return tb, step_bytes(tb)
    # TODO(synk): for very long sequences even tb=128 can exceed the budget;
    # add time-axis tiling (1-row halo for lead_lag) instead of batch-only.
    return 128, step_bytes(128)


# ---------------------------------------------------------------------------
# kernel: direct writes into o_ref slices (no full-output temporaries)
# ---------------------------------------------------------------------------

def _make_kernel(plan):
    has_ll, vis_mid = plan['has_ll'], plan['vis_mid']
    bp_before, bp_after = plan['bp_before'], plan['bp_after']
    c0 = plan['c0']
    t_off = 1 if bp_after else 0
    ch = slice(0, c0) if vis_mid else slice(None)

    def kernel(x_ref, o_ref):
        dt = x_ref.dtype
        # basepoint applied after lead_lag: zero the first output row (all
        # channels, both blocks); written first so later stores never clobber it
        # incorrectly (mid-chain visibility cannot co-occur with bp_after).
        if bp_after:
            o_ref[:, 0:1, :, :] = jnp.zeros(
                (o_ref.shape[0], 1, o_ref.shape[2], o_ref.shape[3]), dt)
        y = x_ref[...]                                     # (n, c0, TB)
        if bp_before:                                      # basepoint before lead_lag
            y = jnp.concatenate(
                [jnp.zeros((1,) + y.shape[1:], dt), y], axis=0)
        if has_ll:
            # duplicate every time row on the *leading* axis (whole-tile copies)
            t_pre = y.shape[0]
            rep = jnp.broadcast_to(y[:, None], (t_pre, 2) + y.shape[1:])
            rep = rep.reshape((2 * t_pre,) + y.shape[1:])
            t_ll = 2 * t_pre - 1
            o_ref[0, t_off:t_off + t_ll, ch, :] = rep[:-1]   # lead block
            o_ref[1, t_off:t_off + t_ll, ch, :] = rep[1:]    # lag block
        else:
            o_ref[0, t_off:t_off + y.shape[0], ch, :] = y
        if vis_mid:
            # mid-chain visibility: its ones channel is appended after any
            # basepoint, so it is 1 at every output row of every block.
            o_ref[:, :, c0:, :] = jnp.ones(
                (o_ref.shape[0], o_ref.shape[1],
                 o_ref.shape[2] - c0, o_ref.shape[3]), dt)
    return kernel


# ---------------------------------------------------------------------------
# builder
# ---------------------------------------------------------------------------

def _build_transform_fn(keys, batch, n, d, dtype):
    kernel_keys, post_keys, pre_vis = _split_plan(keys)
    c0 = d + (1 if pre_vis else 0)
    plan = _make_plan(kernel_keys, n, c0)
    kb, t_out, c_out = plan['kb'], plan['t_out'], plan['c_out']
    itemsize = jnp.dtype(dtype).itemsize

    call = None
    b_pad = batch
    if kernel_keys:
        # lane-dense batch: pad to a multiple of 128 so every store is a full
        # (unmasked) vector store; padding is sliced off after the call.
        b_pad = -(-batch // 128) * 128
        vp = _vmem_plan()
        tb, step_bytes = _pick_batch_tile(b_pad, plan, itemsize, vp)
        vmem_limit = int(min(vp['vmem_cap'],
                             max(32 << 20, step_bytes + (4 << 20))))
        call = pl.pallas_call(
            _make_kernel(plan),
            out_shape=jax.ShapeDtypeStruct((kb, t_out, c_out, b_pad), dtype),
            grid_spec=pltpu.PrefetchScalarGridSpec(
                num_scalar_prefetch=0,
                grid=(b_pad // tb,),
                in_specs=[pl.BlockSpec((n, c0, tb), lambda i: (0, 0, i))],
                out_specs=pl.BlockSpec((kb, t_out, c_out, tb),
                                       lambda i: (0, 0, 0, i)),
            ),
            compiler_params=pltpu.CompilerParams(
                dimension_semantics=("parallel",),
                vmem_limit_bytes=vmem_limit,
                # let XLA fuse the ones-concat / transpose / pad producer into
                # the kernel's input pipeline instead of a separate HBM copy
                allow_input_fusion=[True],
            ),
            cost_estimate=pl.CostEstimate(
                flops=0, transcendentals=0,
                bytes_accessed=int((b_pad * n * c0
                                    + b_pad * kb * t_out * c_out) * itemsize)),
        )

    @jax.jit
    def fn(bank):
        x = bank
        if pre_vis:                                    # visibility first: ones as data
            x = jnp.concatenate(
                [x, jnp.ones(x.shape[:-1] + (1,), x.dtype)], axis=-1)
        if call is not None:
            xt = jnp.transpose(x, (1, 2, 0))           # (n, c0, B) — batch on lanes
            if b_pad != batch:
                xt = jnp.pad(xt, ((0, 0), (0, 0), (0, b_pad - batch)))
            y = call(xt)                               # (Kb, T, C, B_pad)
            # TODO(synk): this transpose back to torch (B, T, C) layout re-reads
            # and re-writes the expanded output; consumers that accept the
            # (Kb, T, C, B) layout directly could skip it entirely.
            out = jnp.transpose(y[..., :batch], (3, 1, 0, 2))
            out = out.reshape(batch, t_out, kb * c_out)
        else:
            out = x
        for k in post_keys:                            # visibility after lead_lag
            if k == 'visibility':
                out = jnp.concatenate(
                    [out, jnp.ones(out.shape[:-1] + (1,), out.dtype)], axis=-1)
            elif k == 'basepoint':
                zero = jnp.zeros((out.shape[0], 1, out.shape[2]), out.dtype)
                out = jnp.concatenate([zero, out], axis=1)
        return out

    return fn


# ---------------------------------------------------------------------------
# module wrapper (API parity with the torch Transformer)
# ---------------------------------------------------------------------------

class TransformerPallas:
    def __init__(self, transforms: OrderedDict, transform_args: OrderedDict,
                 device=None):
        self.transforms = OrderedDict(transforms)
        self.transform_args = OrderedDict(transform_args)
        self.device = device
        self._fn_cache = {}

    def get_t_size(self, n: int):
        size_dict = {'visibility': lambda x: x,
                     'lead_lag': lambda x: int(2 * x - 1),
                     'basepoint': lambda x: x + 1}
        for k, v in self.transforms.items():
            if v:
                n = size_dict[k](n)
        return n

    def _enabled_keys(self):
        keys = tuple(k for k, v in self.transforms.items() if v)
        for k in keys:
            if k not in ('visibility', 'lead_lag', 'basepoint'):
                raise NotImplementedError(f"unknown transform '{k}'")
            # TODO(synk): the `{key}_transform` sources are not in the module;
            # only the standard arg-free definitions are implemented here.
            if self.transform_args.get(k):
                raise NotImplementedError(
                    f"non-empty transform_args for '{k}' are not supported")
        return keys

    def forward(self, bank: jax.Array) -> jax.Array:
        keys = self._enabled_keys()
        if not keys:
            out = bank
        else:
            b, n, d = bank.shape
            cache_key = (keys, b, n, d, jnp.dtype(bank.dtype).name)
            fn = self._fn_cache.get(cache_key)
            if fn is None:
                fn = _build_transform_fn(keys, b, n, d, bank.dtype)
                self._fn_cache[cache_key] = fn
            out = fn(bank)
        if self.device is not None:                    # torch `.to(device)`
            out = jax.device_put(out, self.device)
        return out

    __call__ = forward


# ---------------------------------------------------------------------------
# pure-JAX reference (same sequential, insertion-order semantics)
# ---------------------------------------------------------------------------

def _reference(bank, transforms):
    res = bank
    for k, v in transforms.items():
        if not v:
            continue
        if k == 'visibility':
            ones = jnp.ones(res.shape[:-1] + (1,), res.dtype)
            res = jnp.concatenate([res, ones], axis=-1)
        elif k == 'lead_lag':
            rep = jnp.repeat(res, 2, axis=1)
            res = jnp.concatenate([rep[:, :-1], rep[:, 1:]], axis=-1)
        elif k == 'basepoint':
            zero = jnp.zeros((res.shape[0], 1, res.shape[2]), res.dtype)
            res = jnp.concatenate([zero, res], axis=1)
    return res


if __name__ == "__main__":
    key = jax.random.PRNGKey(0)
    B, n, d = 2, 8, 4                                # small synthetic path bank
    bank = jax.random.normal(key, (B, n, d), dtype=jnp.float32)

    # 1) canonical order: visibility -> lead_lag -> basepoint
    tfs1 = OrderedDict([('visibility', True), ('lead_lag', True), ('basepoint', True)])
    args1 = OrderedDict([('visibility', {}), ('lead_lag', {}), ('basepoint', {})])
    m1 = TransformerPallas(tfs1, args1)
    out1 = jax.block_until_ready(m1.forward(bank))
    assert out1.shape == (B, m1.get_t_size(n), 2 * (d + 1)), out1.shape
    ref1 = _reference(bank, tfs1)
    assert jnp.allclose(out1, ref1, atol=1e-6), float(jnp.max(jnp.abs(out1 - ref1)))

    # 2) basepoint before lead_lag (checks OrderedDict composition order)
    tfs2 = OrderedDict([('visibility', True), ('basepoint', True), ('lead_lag', True)])
    args2 = OrderedDict([('visibility', {}), ('basepoint', {}), ('lead_lag', {})])
    m2 = TransformerPallas(tfs2, args2)
    out2 = jax.block_until_ready(m2.forward(bank))
    ref2 = _reference(bank, tfs2)
    assert out2.shape == (B, m2.get_t_size(n), 2 * (d + 1)), out2.shape
    assert jnp.allclose(out2, ref2, atol=1e-6)

    # 3) mid-chain visibility (basepoint -> visibility -> lead_lag): exercises
    #    the in-kernel ones-channel plane and channel-sliced direct stores.
    tfs3 = OrderedDict([('basepoint', True), ('visibility', True), ('lead_lag', True)])
    args3 = OrderedDict([('basepoint', {}), ('visibility', {}), ('lead_lag', {})])
    m3 = TransformerPallas(tfs3, args3)
    out3 = jax.block_until_ready(m3.forward(bank))
    ref3 = _reference(bank, tfs3)
    assert out3.shape == (B, m3.get_t_size(n), 2 * (d + 1)), out3.shape
    assert jnp.allclose(out3, ref3, atol=1e-6)

    print("KERNEL_OK")
</pallas_src>

<mosaic_0001>
module attributes {stable_mosaic.version = 11 : i64} {
  func.func @kernel(%arg0: i32, %arg1: memref<8x5x128xf32, #tpu.memory_space<vmem>>, %arg2: memref<2x16x5x128xf32, #tpu.memory_space<vmem>>) attributes {dimension_semantics = [#tpu.dimension_semantics<parallel>], iteration_bounds = array<i64: 1>, scalar_prefetch = 0 : i64, scratch_operands = 0 : i64, tpu.core_type = #tpu.core_type<tc>, window_params = [{transform_indices = @transform_0, window_bounds = array<i64: 8, 5, 128>}, {transform_indices = @transform_1, window_bounds = array<i64: 2, 16, 5, 128>}]} {
    %cst = arith.constant 0.000000e+00 : f32
    %0 = vector.broadcast %cst : f32 to vector<2x1x5x128xf32>
    %c0 = arith.constant 0 : index
    %c0_0 = arith.constant 0 : index
    %c0_1 = arith.constant 0 : index
    %c0_2 = arith.constant 0 : index
    %1 = vector.load %arg2[%c0, %c0_0, %c0_1, %c0_2] : memref<2x16x5x128xf32, #tpu.memory_space<vmem>>, vector<2x1x5x128xf32>
    tpu.vector_store %arg2[%c0, %c0_0, %c0_1, %c0_2], %0 {strides = array<i32>} : memref<2x16x5x128xf32, #tpu.memory_space<vmem>>, vector<2x1x5x128xf32>,
    %c0_3 = arith.constant 0 : index
    %c0_4 = arith.constant 0 : index
    %c0_5 = arith.constant 0 : index
    %2 = vector.load %arg1[%c0_3, %c0_4, %c0_5] : memref<8x5x128xf32, #tpu.memory_space<vmem>>, vector<8x5x128xf32>
    %3 = vector.shape_cast %2 : vector<8x5x128xf32> to vector<8x1x5x128xf32>
    %4 = vector.shape_cast %3 : vector<8x1x5x128xf32> to vector<8x1x5x128xf32>
    %5 = vector.broadcast %4 : vector<8x1x5x128xf32> to vector<8x2x5x128xf32>
    %6 = vector.shape_cast %5 : vector<8x2x5x128xf32> to vector<16x5x128xf32>
    %7 = vector.extract_strided_slice %6 {offsets = [0, 0, 0], sizes = [15, 5, 128], strides = [1, 1, 1]} : vector<16x5x128xf32> to vector<15x5x128xf32>
    %c0_6 = arith.constant 0 : index
    %c1 = arith.constant 1 : index
    %c0_7 = arith.constant 0 : index
    %c0_8 = arith.constant 0 : index
    %8 = vector.load %arg2[%c0_6, %c1, %c0_7, %c0_8] : memref<2x16x5x128xf32, #tpu.memory_space<vmem>>, vector<1x15x5x128xf32>
    %9 = vector.shape_cast %8 : vector<1x15x5x128xf32> to vector<15x5x128xf32>
    %10 = vector.shape_cast %7 : vector<15x5x128xf32> to vector<1x15x5x128xf32>
    tpu.vector_store %arg2[%c0_6, %c1, %c0_7, %c0_8], %10 {strides = array<i32>} : memref<2x16x5x128xf32, #tpu.memory_space<vmem>>, vector<1x15x5x128xf32>,
    %11 = vector.extract_strided_slice %6 {offsets = [1, 0, 0], sizes = [15, 5, 128], strides = [1, 1, 1]} : vector<16x5x128xf32> to vector<15x5x128xf32>
    %c1_9 = arith.constant 1 : index
    %c1_10 = arith.constant 1 : index
    %c0_11 = arith.constant 0 : index
    %c0_12 = arith.constant 0 : index
    %12 = vector.load %arg2[%c1_9, %c1_10, %c0_11, %c0_12] : memref<2x16x5x128xf32, #tpu.memory_space<vmem>>, vector<1x15x5x128xf32>
    %13 = vector.shape_cast %12 : vector<1x15x5x128xf32> to vector<15x5x128xf32>
    %14 = vector.shape_cast %11 : vector<15x5x128xf32> to vector<1x15x5x128xf32>
    tpu.vector_store %arg2[%c1_9, %c1_10, %c0_11, %c0_12], %14 {strides = array<i32>} : memref<2x16x5x128xf32, #tpu.memory_space<vmem>>, vector<1x15x5x128xf32>,
    return
  }
  func.func @transform_0(%arg0: i32) -> (i32, i32, i32) {
    %c0_i32 = arith.constant 0 : i32
    %c0_i32_0 = arith.constant 0 : i32
    %c0_i32_1 = arith.constant 0 : i32
    return %c0_i32, %c0_i32_0, %arg0 : i32, i32, i32
  }
  func.func @transform_1(%arg0: i32) -> (i32, i32, i32, i32) {
    %c0_i32 = arith.constant 0 : i32
    %c0_i32_0 = arith.constant 0 : i32
    %c0_i32_1 = arith.constant 0 : i32
    %c0_i32_2 = arith.constant 0 : i32
    return %c0_i32, %c0_i32_0, %c0_i32_1, %arg0 : i32, i32, i32, i32
  }
}

</mosaic_0001>

<bundles_post_ra>
// kernel: fn.2
= control target key start
LH: loop header
LB: loop body
LE: loop exit
PB: predicated region body
PF: predicated region fallthrough
CT: control target
= control target key end

     0   :  { %s367_s0 = inlined_call_operand.vmem [shape: f32[8,5,2], index: 0, kind: input, shape index: {}]   ;;  %s368_s1 = inlined_call_operand.<no memory space> [shape: f32[], index: 1, kind: input, shape index: {}]   ;;  %s369_s2 = inlined_call_operand.vmem [shape: f32[2,16,5,128], index: 2, kind: output, shape index: {}]  }
   0x1   :  { %v7_v0 = vstv %s368_s1 }
   0x2   :  { %v11_v1 = vlaneseq  ;;  %v10_v2 = vld [vmem:[%s367_s0] sm:$0x1f]  ;;  %v174_v3 = vld [vmem:[%s367_s0 + $0x8] sm:$0x1f]  ;;  %v175_v6 = vld [vmem:[%s367_s0 + $0x10] sm:$0x1f] }
   0x3   :  { %v176_v7 = vld [vmem:[%s367_s0 + $0x18] sm:$0x1f]  ;;  %v177_v8 = vld [vmem:[%s367_s0 + $0x20] sm:$0x1f]  ;;  %v178_v9 = vld [vmem:[%s367_s0 + $0x28] sm:$0x1f] }
   0x4   :  { %v12_v4 = vshrl.u32 %v11_v1, 7  ;;  %v17_v5 = vand.u32 127, %v11_v1  ;;  %v179_v10 = vld [vmem:[%s367_s0 + $0x30] sm:$0x1f]  ;;  %v180_v11 = vld [vmem:[%s367_s0 + $0x38] sm:$0x1f] }
   0x5   :  { %v212_v12 = vmov 0.0  }
   0x6   :  { %vm14_vm0 = vcmp.lt.s32.totalorder %v12_v4, 5  ;;  %vm19_vm1 = vcmp.lt.s32.totalorder %v17_v5, 2  ;;  %128 = vst [vmem:[%s369_s2] sm:$0x1f] %v212_v12  ;;  %129 = vst [vmem:[%s369_s2 + $0x80] sm:$0x1f] %v212_v12 }
   0x7   :  { %v15_v13 = vsel %vm14_vm0, %v10_v2, %v7_v0  ;;  %v29_v14 = vsel %vm14_vm0, %v174_v3, %v7_v0  ;;  %v44_v15 = vsel %vm14_vm0, %v175_v6, %v7_v0  ;;  %v59_v16 = vsel %vm14_vm0, %v176_v7, %v7_v0 }
   0x8   :  { %v20_v17 = vsel %vm19_vm1, %v15_v13, %v7_v0  ;;  %v34_v18 = vsel %vm19_vm1, %v29_v14, %v7_v0  ;;  %v49_v19 = vsel %vm19_vm1, %v44_v15, %v7_v0  ;;  %v64_v20 = vsel %vm19_vm1, %v59_v16, %v7_v0 }
   0x9   :  { %22 = vst [vmem:[#allocation7] sm:$0xff] %v20_v17  ;;  %37 = vst [vmem:[#allocation7 + $0x8] sm:$0xff] %v34_v18  ;;  %v74_v21 = vsel %vm14_vm0, %v177_v8, %v7_v0  ;;  %v89_v22 = vsel %vm14_vm0, %v178_v9, %v7_v0  ;;  %v104_v23 = vsel %vm14_vm0, %v179_v10, %v7_v0 }
   0xa   :  { %52 = vst [vmem:[#allocation7 + $0x10] sm:$0xff] %v49_v19  ;;  %67 = vst [vmem:[#allocation7 + $0x18] sm:$0xff] %v64_v20  ;;  %v119_v24 = vsel %vm14_vm0, %v180_v11, %v7_v0  ;;  %v79_v25 = vsel %vm19_vm1, %v74_v21, %v7_v0  ;;  %v94_v26 = vsel %vm19_vm1, %v89_v22, %v7_v0 }
   0xb   :  { %v109_v27 = vsel %vm19_vm1, %v104_v23, %v7_v0  ;;  %v124_v28 = vsel %vm19_vm1, %v119_v24, %v7_v0  ;;  %82 = vst [vmem:[#allocation7 + $0x20] sm:$0xff] %v79_v25  ;;  %97 = vst [vmem:[#allocation7 + $0x28] sm:$0xff] %v94_v26 }
   0xc   :  { %112 = vst [vmem:[#allocation7 + $0x30] sm:$0xff] %v109_v27  ;;  %127 = vst [vmem:[#allocation7 + $0x38] sm:$0xff] %v124_v28 }
  0x10   :  { %v130_v29 = vld [vmem:[#allocation7] sm:$0x1f]  ;;  %v131_v30 = vld [vmem:[#allocation7 + $0x8] sm:$0x1f] }
  0x11   :  { %v132_v31 = vld [vmem:[#allocation7 + $0x10] sm:$0x1f]  ;;  %v133_v32 = vld [vmem:[#allocation7 + $0x18] sm:$0x1f]  ;;  %181 = vst [vmem:[%s369_s2 + $0x8] sm:$0x1f] %v130_v29 }
  0x12   :  { %182 = vst [vmem:[%s369_s2 + $0x10] sm:$0x1f] %v130_v29  ;;  %183 = vst [vmem:[%s369_s2 + $0x18] sm:$0x1f] %v131_v30  ;;  %v134_v33 = vld [vmem:[#allocation7 + $0x20] sm:$0x1f] }
  0x13   :  { %184 = vst [vmem:[%s369_s2 + $0x20] sm:$0x1f] %v131_v30  ;;  %185 = vst [vmem:[%s369_s2 + $0x28] sm:$0x1f] %v132_v31  ;;  %v135_v34 = vld [vmem:[#allocation7 + $0x28] sm:$0x1f] }
  0x14   :  { %186 = vst [vmem:[%s369_s2 + $0x30] sm:$0x1f] %v132_v31  ;;  %196 = vst [vmem:[%s369_s2 + $0x88] sm:$0x1f] %v130_v29  ;;  %v136_v35 = vld [vmem:[#allocation7 + $0x30] sm:$0x1f] }
  0x15   :  { %197 = vst [vmem:[%s369_s2 + $0x90] sm:$0x1f] %v131_v30  ;;  %198 = vst [vmem:[%s369_s2 + $0x98] sm:$0x1f] %v131_v30  ;;  %v137_v36 = vld [vmem:[#allocation7 + $0x38] sm:$0x1f] }
  0x16   :  { %199 = vst [vmem:[%s369_s2 + $0xa0] sm:$0x1f] %v132_v31  ;;  %200 = vst [vmem:[%s369_s2 + $0xa8] sm:$0x1f] %v132_v31 }
  0x17   :  { %187 = vst [vmem:[%s369_s2 + $0x38] sm:$0x1f] %v133_v32  ;;  %188 = vst [vmem:[%s369_s2 + $0x40] sm:$0x1f] %v133_v32 }
  0x18   :  { %201 = vst [vmem:[%s369_s2 + $0xb0] sm:$0x1f] %v133_v32  ;;  %202 = vst [vmem:[%s369_s2 + $0xb8] sm:$0x1f] %v133_v32 }
  0x19   :  { %189 = vst [vmem:[%s369_s2 + $0x48] sm:$0x1f] %v134_v33  ;;  %190 = vst [vmem:[%s369_s2 + $0x50] sm:$0x1f] %v134_v33 }
  0x1a   :  { %191 = vst [vmem:[%s369_s2 + $0x58] sm:$0x1f] %v135_v34  ;;  %192 = vst [vmem:[%s369_s2 + $0x60] sm:$0x1f] %v135_v34 }
  0x1b   :  { %193 = vst [vmem:[%s369_s2 + $0x68] sm:$0x1f] %v136_v35  ;;  %194 = vst [vmem:[%s369_s2 + $0x70] sm:$0x1f] %v136_v35 }
  0x1c   :  { %203 = vst [vmem:[%s369_s2 + $0xc0] sm:$0x1f] %v134_v33  ;;  %204 = vst [vmem:[%s369_s2 + $0xc8] sm:$0x1f] %v134_v33 }
  0x1d   :  { %205 = vst [vmem:[%s369_s2 + $0xd0] sm:$0x1f] %v135_v34  ;;  %206 = vst [vmem:[%s369_s2 + $0xd8] sm:$0x1f] %v135_v34 }
  0x1e   :  { %207 = vst [vmem:[%s369_s2 + $0xe0] sm:$0x1f] %v136_v35  ;;  %208 = vst [vmem:[%s369_s2 + $0xe8] sm:$0x1f] %v136_v35 }
  0x1f   :  { %195 = vst [vmem:[%s369_s2 + $0x78] sm:$0x1f] %v137_v36  ;;  %209 = vst [vmem:[%s369_s2 + $0xf0] sm:$0x1f] %v137_v36 }
  0x20   :  { %210 = vst [vmem:[%s369_s2 + $0xf8] sm:$0x1f] %v137_v36 }

</bundles_post_ra>
